<compile_context>
chip_gen: v5e
topology: v5e:2x2
jax: 0.10.0
libtpu: 0.0.40
codegen_flags: <defaults>
</compile_context>

<pallas_src>
import jax
import jax.numpy as jnp
from jax import lax
from jax.experimental import pallas as pl
from jax.experimental.pallas import tpu as pltpu


def _round_up(x, m):
    return ((x + m - 1) // m) * m


# ----------------------------------------------------------------------------- kernel
def _dense_kernel(x_ref, w_ref, b_ref, o_ref):
    # x_ref: (tm, tk)   activation tile
    # w_ref: (tk, tn)   pre-transposed weight tile ((D_in, D_out) layout)
    # b_ref: (1,  tn)   bias tile (f32)
    # o_ref: (tm, tn)   f32 output tile; resident across K -> used as the accumulator
    k = pl.program_id(2)

    @pl.when(k == 0)
    def _init():
        # Bias is added exactly once, by initializing the resident output tile.
        o_ref[...] = jnp.broadcast_to(b_ref[...].astype(o_ref.dtype), o_ref.shape)

    # Plain (tm,tk)@(tk,tn) contraction on the MXU with f32 accumulation.
    # x is cast to the weight dtype (no-op for f32; VPU cast for the bf16 path).
    o_ref[...] += jnp.dot(
        x_ref[...].astype(w_ref.dtype),
        w_ref[...],
        preferred_element_type=jnp.float32,
    )


# ----------------------------------------------------------------------------- sizing
def _vmem_budget_bytes():
    cap = None
    try:
        cap = getattr(pltpu.get_tpu_info(), "vmem_capacity_bytes", None)
    except Exception:
        cap = None
    if not cap:
        cap = 64 * 1024 * 1024  # v7x per-TensorCore floor; safe on every generation
    # ~70% of physical, capped at 96 MiB (v5e/v6e), floored at 32 MiB.
    return max(min(int(cap * 0.7), 96 * 1024 * 1024), 32 * 1024 * 1024)


def _choose_tiles(B, D_in, D_out, elem_bytes, budget):
    TM_CAP, TN_CAP, TK_CAP = 1024, 512, 1024

    # --- M (sublane axis): multiple of 8, or the full dim when that is smaller.
    if B <= TM_CAP:
        tm = _round_up(B, 8)
        if tm > B:          # B not a multiple of 8 -> full-dim block (always legal)
            tm = B
    else:
        nm0 = pl.cdiv(B, TM_CAP)
        tm = _round_up(pl.cdiv(B, nm0), 8)   # avoid a nearly-empty trailing block

    # --- K (reduction): single full-dim block when it fits; otherwise a
    #     128-multiple that divides D_in (no pad); zero-pad K only as a last resort.
    k_pad = 0
    if D_in <= TK_CAP:
        tk = D_in
    else:
        tk = 0
        for cand in range(TK_CAP, 127, -128):
            if D_in % cand == 0:
                tk = cand
                break
        if tk == 0:
            tk = TK_CAP
            k_pad = _round_up(D_in, tk) - D_in

    # --- N (lane axis): multiple of 128, or the full dim when D_out < 128.
    if D_out < 128:
        tn = D_out
    else:
        tn = min(TN_CAP, (D_out // 128) * 128)

    # --- Guarantee >=2 blocks on the parallel (M, N) axes when possible so the
    #     grid can shard across both TensorCores on v7x.
    if pl.cdiv(B, tm) * pl.cdiv(D_out, tn) < 2:
        if tn >= 256 and D_out >= 256:
            tn = max(128, ((tn // 2) // 128) * 128)
        elif B >= 16:
            tm = max(8, _round_up(pl.cdiv(B, 2), 8))

    # --- Keep the double/triple-buffered working set inside the VMEM budget.
    def ws(tm_, tn_, tk_):
        return (2 * tm_ * tk_ * elem_bytes        # x (double-buffered)
                + 3 * tk_ * tn_ * elem_bytes      # weight (up to 3-deep)
                + 2 * tn_ * 4                     # bias
                + 2 * tm_ * tn_ * 4)              # f32 output / accumulator

    while ws(tm, tn, tk) > budget:
        if tm > 256:
            tm = max(8, _round_up(tm // 2, 8))
        elif tn > 128:
            tn = max(128, ((tn // 2) // 128) * 128)
        else:
            break

    return tm, tn, tk, k_pad


# ----------------------------------------------------------------------------- wrapper
def prepare_dense_params(weight, bias, compute_dtype=None):
    """One-time (model-load) parameter prep.

    weight: (D_out, D_in) PyTorch nn.Linear layout -> transposed to (D_in, D_out)
            so the kernel contracts without any per-tile transpose.
    compute_dtype: e.g. jnp.bfloat16 to store the weight in bf16 (f32 accumulation
            stays in the kernel).  None keeps f32 (exact module semantics).
    """
    w_t = jnp.asarray(weight).T
    if compute_dtype is not None:
        w_t = w_t.astype(compute_dtype)
    b2d = jnp.asarray(bias).reshape(1, -1).astype(jnp.float32)
    return w_t, b2d


def dense_forward(x, w_t, b2d):
    """Pallas equivalent of Dense.forward: (x @ W^T + b)[..., None, None].

    x:   (..., D_in) float32
    w_t: (D_in, D_out) f32 or bf16 (from prepare_dense_params)
    b2d: (1, D_out) float32
    returns (..., D_out, 1, 1) float32
    """
    D_in, D_out = w_t.shape
    if x.shape[-1] != D_in:
        raise ValueError(f"x last dim {x.shape[-1]} != D_in {D_in}")

    lead = x.shape[:-1]
    x2 = x.reshape(-1, D_in)
    B = x2.shape[0]

    elem_bytes = jnp.dtype(w_t.dtype).itemsize
    budget = _vmem_budget_bytes()
    tm, tn, tk, k_pad = _choose_tiles(B, D_in, D_out, elem_bytes, budget)

    # Only K is ever zero-padded (zeros contribute nothing to the accumulation).
    if k_pad:
        x2 = jnp.pad(x2, ((0, 0), (0, k_pad)))
        w_t = jnp.pad(w_t, ((0, k_pad), (0, 0)))
    Kp = D_in + k_pad

    nm = pl.cdiv(B, tm)
    nn = pl.cdiv(D_out, tn)
    nk = Kp // tk
    grid = (nm, nn, nk)

    # 3-deep weight buffering for small-B / weight-streaming shapes.
    w_depth = 3 if (nk * nn >= 3 and tm <= 256) else 2
    w_index_map = lambda i, j, k: (k, j)
    w_spec = pl.BlockSpec((tk, tn), w_index_map)
    if w_depth > 2 and hasattr(pl, "Buffered"):
        try:
            w_spec = pl.BlockSpec((tk, tn), w_index_map,
                                  pipeline_mode=pl.Buffered(w_depth))
        except TypeError:
            pass  # older BlockSpec signature: fall back to default double-buffering

    # Scheduler hint reflecting the real streaming traffic (x re-read nn times,
    # W re-read nm times across the grid).
    cost = pl.CostEstimate(
        flops=2 * B * Kp * D_out,
        transcendentals=0,
        bytes_accessed=(x2.size * x2.dtype.itemsize * nn
                        + w_t.size * w_t.dtype.itemsize * nm
                        + b2d.size * 4
                        + B * D_out * 4),
    )

    y = pl.pallas_call(
        _dense_kernel,
        out_shape=jax.ShapeDtypeStruct((B, D_out), jnp.float32),
        grid_spec=pltpu.PrefetchScalarGridSpec(
            num_scalar_prefetch=0,
            grid=grid,
            in_specs=[
                pl.BlockSpec((tm, tk), lambda i, j, k: (i, k)),  # x tile
                w_spec,                                           # (tk, tn) weight tile
                pl.BlockSpec((1, tn), lambda i, j, k: (0, j)),    # bias tile
            ],
            out_specs=pl.BlockSpec((tm, tn), lambda i, j, k: (i, j)),
        ),
        compiler_params=pltpu.CompilerParams(
            dimension_semantics=("parallel", "parallel", "arbitrary"),
            vmem_limit_bytes=budget,
        ),
        cost_estimate=cost,
    )(x2, w_t, b2d)

    # [..., None, None] in PyTorch -> append two trailing singleton dims.
    return y.reshape(*lead, D_out, 1, 1)


# ----------------------------------------------------------------------------- tests
if __name__ == "__main__":
    key = jax.random.PRNGKey(0)
    keys = jax.random.split(key, 9)
    HI = lax.Precision.HIGHEST

    # --- Case 1: module-scale shapes (batch=2, input_dim=32, output_dim=64), f32 ---
    B, D_in, D_out = 2, 32, 64
    x = jax.random.normal(keys[0], (B, D_in), dtype=jnp.float32)
    bound = 1.0 / (D_in ** 0.5)
    w = jax.random.uniform(keys[1], (D_out, D_in), minval=-bound, maxval=bound,
                           dtype=jnp.float32)
    b = jax.random.uniform(keys[2], (D_out,), minval=-bound, maxval=bound,
                           dtype=jnp.float32)

    w_t, b2d = prepare_dense_params(w, b)
    out = jax.block_until_ready(dense_forward(x, w_t, b2d))
    ref = (jnp.dot(x, w.T, precision=HI) + b)[:, :, None, None]
    assert out.shape == (B, D_out, 1, 1), out.shape
    assert jnp.allclose(out, ref, atol=1e-5, rtol=1e-5)

    # --- Case 2: unaligned M/N -> partial edge blocks, no HBM padding, f32 ---
    B2, D_in2, D_out2 = 10, 200, 300
    x2 = jax.random.normal(keys[3], (B2, D_in2), dtype=jnp.float32)
    bound2 = 1.0 / (D_in2 ** 0.5)
    w2 = jax.random.uniform(keys[4], (D_out2, D_in2), minval=-bound2, maxval=bound2,
                            dtype=jnp.float32)
    b2 = jax.random.uniform(keys[5], (D_out2,), minval=-bound2, maxval=bound2,
                            dtype=jnp.float32)

    w2_t, b2_2d = prepare_dense_params(w2, b2)
    out2 = jax.block_until_ready(dense_forward(x2, w2_t, b2_2d))
    ref2 = (jnp.dot(x2, w2.T, precision=HI) + b2)[:, :, None, None]
    assert out2.shape == (B2, D_out2, 1, 1), out2.shape
    assert jnp.allclose(out2, ref2, atol=1e-4, rtol=1e-4)

    # --- Case 3: multi-(N,K) grid, 3-deep weight pipeline; f32 and bf16 paths ---
    B3, D_in3, D_out3 = 16, 2048, 1536
    x3 = jax.random.normal(keys[6], (B3, D_in3), dtype=jnp.float32)
    bound3 = 1.0 / (D_in3 ** 0.5)
    w3 = jax.random.uniform(keys[7], (D_out3, D_in3), minval=-bound3, maxval=bound3,
                            dtype=jnp.float32)
    b3 = jax.random.uniform(keys[8], (D_out3,), minval=-bound3, maxval=bound3,
                            dtype=jnp.float32)
    ref3 = (jnp.dot(x3, w3.T, precision=HI) + b3)[:, :, None, None]

    w3_t, b3_2d = prepare_dense_params(w3, b3)                      # exact f32 path
    out3 = jax.block_until_ready(dense_forward(x3, w3_t, b3_2d))
    assert out3.shape == (B3, D_out3, 1, 1), out3.shape
    assert jnp.allclose(out3, ref3, atol=1e-4, rtol=1e-4)

    w3_bf, b3_bf = prepare_dense_params(w3, b3, compute_dtype=jnp.bfloat16)
    out3_bf = jax.block_until_ready(dense_forward(x3, w3_bf, b3_bf))  # bf16 MXU path
    assert out3_bf.shape == (B3, D_out3, 1, 1), out3_bf.shape
    assert jnp.allclose(out3_bf, ref3, atol=5e-2, rtol=5e-2)

    print("KERNEL_OK")
</pallas_src>

<mosaic_0001>
module attributes {stable_mosaic.version = 11 : i64} {
  func.func @_dense_kernel(%arg0: i32, %arg1: i32, %arg2: i32, %arg3: memref<2x32xf32, #tpu.memory_space<vmem>>, %arg4: memref<32x64xf32, #tpu.memory_space<vmem>>, %arg5: memref<1x64xf32, #tpu.memory_space<vmem>>, %arg6: memref<2x64xf32, #tpu.memory_space<vmem>>) attributes {dimension_semantics = [#tpu.dimension_semantics<parallel>, #tpu.dimension_semantics<parallel>, #tpu.dimension_semantics<arbitrary>], iteration_bounds = array<i64: 1, 1, 1>, scalar_prefetch = 0 : i64, scratch_operands = 0 : i64, tpu.core_type = #tpu.core_type<tc>, window_params = [{transform_indices = @transform_0, window_bounds = array<i64: 2, 32>}, {transform_indices = @transform_1, window_bounds = array<i64: 32, 64>}, {transform_indices = @transform_2, window_bounds = array<i64: 1, 64>}, {transform_indices = @transform_3, window_bounds = array<i64: 2, 64>}]} {
    %c0_i32 = arith.constant 0 : i32
    %0 = arith.cmpi eq, %arg2, %c0_i32 : i32
    %1 = arith.extui %0 : i1 to i32
    %c0_i32_0 = arith.constant 0 : i32
    %2 = arith.cmpi ne, %1, %c0_i32_0 : i32
    scf.if %2 {
      %c0_8 = arith.constant 0 : index
      %c0_9 = arith.constant 0 : index
      %9 = vector.load %arg5[%c0_8, %c0_9] : memref<1x64xf32, #tpu.memory_space<vmem>>, vector<1x64xf32>
      %10 = vector.shape_cast %9 : vector<1x64xf32> to vector<1x64xf32>
      %11 = vector.broadcast %10 : vector<1x64xf32> to vector<2x64xf32>
      %c0_10 = arith.constant 0 : index
      %c0_11 = arith.constant 0 : index
      %12 = vector.load %arg6[%c0_10, %c0_11] : memref<2x64xf32, #tpu.memory_space<vmem>>, vector<2x64xf32>
      tpu.vector_store %arg6[%c0_10, %c0_11], %11 {strides = array<i32>} : memref<2x64xf32, #tpu.memory_space<vmem>>, vector<2x64xf32>,
    } else {
    }
    %c0 = arith.constant 0 : index
    %c0_1 = arith.constant 0 : index
    %3 = vector.load %arg6[%c0, %c0_1] : memref<2x64xf32, #tpu.memory_space<vmem>>, vector<2x64xf32>
    %c0_2 = arith.constant 0 : index
    %c0_3 = arith.constant 0 : index
    %4 = vector.load %arg3[%c0_2, %c0_3] : memref<2x32xf32, #tpu.memory_space<vmem>>, vector<2x32xf32>
    %c0_4 = arith.constant 0 : index
    %c0_5 = arith.constant 0 : index
    %5 = vector.load %arg4[%c0_4, %c0_5] : memref<32x64xf32, #tpu.memory_space<vmem>>, vector<32x64xf32>
    %cst = arith.constant dense<0.000000e+00> : vector<2x64xf32>
    %6 = tpu.matmul %4, %5, %cst {dimension_numbers = #tpu.dot_dimension_numbers<[1], [0], [0], [1], [0, 0, 1, 1], [], []>} : vector<2x32xf32>, vector<32x64xf32>, vector<2x64xf32> -> vector<2x64xf32>
    %7 = arith.addf %3, %6 : vector<2x64xf32>
    %c0_6 = arith.constant 0 : index
    %c0_7 = arith.constant 0 : index
    %8 = vector.load %arg6[%c0_6, %c0_7] : memref<2x64xf32, #tpu.memory_space<vmem>>, vector<2x64xf32>
    tpu.vector_store %arg6[%c0_6, %c0_7], %7 {strides = array<i32>} : memref<2x64xf32, #tpu.memory_space<vmem>>, vector<2x64xf32>,
    return
  }
  func.func @transform_0(%arg0: i32, %arg1: i32, %arg2: i32) -> (i32, i32) {
    %c0_i32 = arith.constant 0 : i32
    return %arg0, %arg2 : i32, i32
  }
  func.func @transform_1(%arg0: i32, %arg1: i32, %arg2: i32) -> (i32, i32) {
    %c0_i32 = arith.constant 0 : i32
    return %arg2, %arg1 : i32, i32
  }
  func.func @transform_2(%arg0: i32, %arg1: i32, %arg2: i32) -> (i32, i32) {
    %c0_i32 = arith.constant 0 : i32
    %c0_i32_0 = arith.constant 0 : i32
    return %c0_i32, %arg1 : i32, i32
  }
  func.func @transform_3(%arg0: i32, %arg1: i32, %arg2: i32) -> (i32, i32) {
    %c0_i32 = arith.constant 0 : i32
    return %arg0, %arg1 : i32, i32
  }
}

</mosaic_0001>

<bundles_post_ra>
// kernel: tpu_custom_call.1
= control target key start
LH: loop header
LB: loop body
LE: loop exit
PB: predicated region body
PF: predicated region fallthrough
CT: control target
= control target key end

     0   :  { %8 = vsyncpa [#allocation3], 0  ;;  %s230_s0 = inlined_call_operand.hbm [shape: f32[2,32], index: 0, kind: input, shape index: {}]   ;;  %s231_s1 = inlined_call_operand.hbm [shape: f32[32,64], index: 1, kind: input, shape index: {}]   ;;  %s232_s2 = inlined_call_operand.vmem [shape: f32[1,64], index: 2, kind: input, shape index: {}]   ;;  %s233_s3 = inlined_call_operand.hbm [shape: f32[2,64], index: 3, kind: output, shape index: {}]  }
   0x1   :  { %9 = vsyncpa [#allocation6], 0 }
   0x2   :  { %10 = vsyncpa [#allocation4], 0  ;;  %s16_s14 = sshll.u32 %s230_s0, 4  ;;  %s191_s15 = smov [#allocation2]   ;;  %s17_s14 = int_to_ptr.hbm [resolvable:$true] %s16_s14 }
   0x3   :  { %s18_s16 = sshll.u32 %s191_s15, 4  ;;  %s26_s19 = sshll.u32 %s231_s1, 4  ;;  %s19_s16 = int_to_ptr.vmem [resolvable:$true] %s18_s16  ;;  %s27_s19 = int_to_ptr.hbm [resolvable:$true] %s26_s19 }
   0x4   :  { %21 = dma.hbm_to_vmem [thread:$0]  %s17_s14, 32, %s19_s16, [#allocation3]  }
   0x5   :  { %s192_s20 = smov [#allocation5]   ;;  %s193_s22 = smov 128  }
   0x6   :  { %s28_s21 = sshll.u32 %s192_s20, 4  ;;  %s194_s23 = smov 8   ;;  %s29_s21 = int_to_ptr.vmem [resolvable:$true] %s28_s21 }
   0x7   :  { %34 = dma.hbm_to_vmem [thread:$0]  %s27_s19, 512, %s29_s21, [#allocation6], %s193_s22, %s193_s22, %s194_s23  }
   0x8   :  { %185 = dma.done.wait [#allocation3], 32  }
   0x9   :  { %186 = vsyncadd [#allocation3], 4294967264 }
   0xa   :  { %187 = dma.done.wait [#allocation6], 512  }
   0xb   :  { %188 = vsyncadd [#allocation6], 4294966784  ;;  %vm53_vm0 = vcmask 517120   ;;  %v112_v0 = vld [vmem:[%s232_s2] ss:$0 sm:$0xff]  ;;  %v59_v2 = vld [vmem:[#allocation5 + $0x10] sm:$0xff] }
   0xc   :  { %v60_v1 = vld [vmem:[#allocation5 + $0x18] sm:$0xff]  ;;  %54 = vst.msk [vmem:[#allocation7] sm:$0x3] %vm53_vm0, %v112_v0  ;;  %v58_v3 = vld [vmem:[#allocation5 + $0x8] sm:$0xff]  ;;  %v57_v4 = vld [vmem:[#allocation5] sm:$0xff]  ;;  %vm61_vm1 = vcmask 261120  }
   0xd   :  { %77 = vmatpush.msra.mxu0 %v60_v1  ;;  %v56_v5 = vld [vmem:[#allocation2] sm:$0x3]  ;;  %s195_s1 = smov [#allocation7]   ;;  %s95_s2 = sshll.u32 %s233_s3, 4  ;;  %s96_s2 = int_to_ptr.hbm [resolvable:$true] %s95_s2 }
   0xe   :  { %s93_s25 = sshll.u32 %s195_s1, 4  ;;  %s94_s25 = int_to_ptr.vmem [resolvable:$true] %s93_s25 }
   0xf   :  { %78 = vmatpush.msra.mxu0 %v59_v2 }
  0x11   :  { %79 = vmatpush.msra.mxu0 %v58_v3 }
  0x13   :  { %80 = vmatpush.msra.mxu0 %v57_v4  ;;  %v55_v6 = vld [vmem:[#allocation7] sm:$0x3] }
  0x14   :  { %106 = vmatmul.msk.f32.vlgmr.msra.gmra.mxu0 %vm61_vm1, %v56_v5 }
  0x91   :  { %v82_v7 = vpop.f32.mrf.mxu0 }
  0x92   :  { %v85_v8 = vadd.f32 %v82_v7, %v55_v6 }
  0x94   :  { %87 = vst.msk [vmem:[#allocation7] sm:$0x3] %vm53_vm0, %v85_v8 }
  0x95   :  { %98 = dma.vmem_to_hbm [thread:$0]  %s94_s25, 32, %s96_s2, [#allocation4]  }
  0x96   :  { %189 = dma.done.wait [#allocation4], 32  }
  0x97   :  { %190 = vsyncadd [#allocation4], 4294967264 }
  0x98   :  { %103 = vsyncpa [#allocation3], 1 }
  0x99   :  { %104 = vsyncpa [#allocation6], 1 }
  0x9a   :  { %105 = vsyncpa [#allocation4], 1 }

</bundles_post_ra>
